<compile_context>
chip_gen: v7x
topology: tpu7x:2x2x1
jax: 0.10.0
libtpu: 0.0.40
codegen_flags: <defaults>
</compile_context>

<pallas_src>
import functools
import math

import jax
import jax.numpy as jnp
from jax import lax
from jax.experimental import pallas as pl
from jax.experimental.pallas import tpu as pltpu

_TINY = 1e-13  # allennlp tiny_value_of_dtype(float32)


def _round_up(x, m):
    return (x + m - 1) // m * m


def _cdiv(a, b):
    return (a + b - 1) // b


def _vmem_capacity_bytes():
    try:
        return int(pltpu.get_tpu_info().vmem_capacity_bytes)
    except Exception:
        return 64 * 1024 * 1024  # conservative default (v7x per-TC)


def _sdp_kernel(q_ref, k_ref, o_ref, *, inv_temp, lk_valid, matmul_dtype):
    # q_ref: (bb, TQ, D)  k_ref: (bb, Lk_pad, D)  o_ref: (bb, TQ, Lk_pad)
    q = q_ref[...] * inv_temp            # fold 1/temperature into q (bb*TQ*D work)
    if matmul_dtype is not None:
        q = q.astype(matmul_dtype)       # bf16 MXU operand; k already cast in wrapper
    k = k_ref[...]
    # batched contraction of the last dims -> no explicit k.T / XLU transpose
    s = lax.dot_general(q, k, (((2,), (2,)), ((0,), (0,))),
                        preferred_element_type=jnp.float32)
    lk_pad = s.shape[-1]
    if lk_pad != lk_valid:               # exclude padded key columns (static branch)
        col = lax.broadcasted_iota(jnp.int32, (1, 1, lk_pad), 2)
        s = jnp.where(col < lk_valid, s, -1e30)
    m = jnp.max(s, axis=-1, keepdims=True)
    e = jnp.exp(s - m)
    denom = jnp.sum(e, axis=-1, keepdims=True)
    # exact reciprocal only over the (bb, TQ, 1) column; tile pass is a multiply
    o_ref[...] = (e * (1.0 / denom)).astype(o_ref.dtype)


def _sdp_masked_kernel(q_ref, k_ref, m_ref, o_ref, *, inv_temp, matmul_dtype):
    # AllenNLP masked_softmax (standard, non-memory-efficient path), fused:
    #   r = softmax(s*mask); r = r*mask; r = r/(sum(r)+tiny)
    #   == e*mask / (sum(e*mask) + tiny*sum(e)),  e = exp(s*mask - max(s*mask))
    # mask arrives unbroadcast as (bb, 1, Lk_pad) and broadcasts over TQ rows.
    # Padded key columns carry mask=0, handled natively by this formula.
    q = q_ref[...] * inv_temp
    if matmul_dtype is not None:
        q = q.astype(matmul_dtype)
    k = k_ref[...]
    mask = m_ref[...]                    # (bb, 1, Lk_pad)
    s = lax.dot_general(q, k, (((2,), (2,)), ((0,), (0,))),
                        preferred_element_type=jnp.float32)
    sm = s * mask
    m = jnp.max(sm, axis=-1, keepdims=True)
    e = jnp.exp(sm - m)
    em = e * mask
    denom = (jnp.sum(em, axis=-1, keepdims=True)
             + _TINY * jnp.sum(e, axis=-1, keepdims=True))
    o_ref[...] = (em * (1.0 / denom)).astype(o_ref.dtype)


def _choose_tiles(B, Lq, lk_pad, D, masked, q_bytes, k_bytes, out_bytes,
                  budget, max_tq=None):
    """Pick (batch block, Lq tile, #Lq tiles) that fit the VMEM budget."""

    def step_bytes(bb, tq):
        dbuf = 2                                    # pallas double-buffers each spec
        q_b = dbuf * bb * tq * D * q_bytes
        k_b = dbuf * bb * lk_pad * D * k_bytes
        m_b = dbuf * bb * lk_pad * 4 if masked else 0
        o_b = dbuf * bb * tq * lk_pad * out_bytes
        tmp = 2 * bb * tq * lk_pad * 4              # softmax temporaries (s, e) in f32
        return q_b + k_b + m_b + o_b + tmp

    # 1) largest Lq tile (multiple of 8, capped at 512) that fits the budget
    tq = min(512, _round_up(Lq, 8))
    while tq > 8 and step_bytes(1, tq) > budget:
        tq = _round_up(tq // 2, 8)
    if max_tq is not None:
        tq = max(8, min(tq, _round_up(max_tq, 8)))

    # 2) rebalance so lq_pad does not overshoot (padding < 8 rows, not < tq rows)
    n_q = _cdiv(Lq, tq)
    tq = _round_up(_cdiv(Lq, n_q), 8)

    # 3) block several batch elements per grid step when per-step work is tiny
    bb = 1
    if B > 1 and tq * lk_pad <= 128 * 512:
        for d in range(1, B + 1):
            if B % d == 0 and step_bytes(d, tq) <= budget:
                bb = d
    return bb, tq, n_q


def scaled_dot_product(q, k, mask=None, *, temperature,
                       matmul_dtype=jnp.bfloat16, out_dtype=jnp.float32,
                       max_tq=None):
    """Pallas TPU implementation of ScaledDotProduct.forward (dropout p=0.0).

    q: [B, Lq, D] or [Lq, D]
    k: [B, Lk, D] or [Lk, D]
    mask: optional [B, Lk] (or [Lk] in the 2-D case), values in {0, 1}.
    Returns attention probabilities [B, Lq, Lk] (or [Lq, Lk]) in `out_dtype`.
    """
    batchlize = q.ndim > 2
    if not batchlize:
        q = q[None]
        k = k[None]
        if mask is not None:
            mask = mask[None]

    B, Lq, D = q.shape
    _, Lk, _ = k.shape

    # bf16 MXU operands by default: half-size resident K block + half K DMA;
    # f32 MXU accumulate (preferred_element_type) preserves accuracy.
    if matmul_dtype is not None and k.dtype != matmul_dtype:
        k = k.astype(matmul_dtype)

    lk_pad = _round_up(Lk, 128)                     # lane-dense output stores

    vmem_cap = _vmem_capacity_bytes()
    budget = vmem_cap // 2                          # 32 MiB v7x, 64 MiB v5e/v6e
    vmem_limit = (vmem_cap * 3) // 4                # 48 MiB v7x, 96 MiB v5e/v6e

    q_bytes = jnp.dtype(q.dtype).itemsize
    k_bytes = jnp.dtype(k.dtype).itemsize
    out_bytes = jnp.dtype(out_dtype).itemsize

    bb, tq, n_q = _choose_tiles(B, Lq, lk_pad, D, mask is not None,
                                q_bytes, k_bytes, out_bytes, budget, max_tq)
    lq_pad = n_q * tq

    if lq_pad != Lq:
        q = jnp.pad(q, ((0, 0), (0, lq_pad - Lq), (0, 0)))
    if lk_pad != Lk:
        k = jnp.pad(k, ((0, 0), (0, lk_pad - Lk), (0, 0)))

    grid = (B // bb, n_q)
    q_spec = pl.BlockSpec((bb, tq, D), lambda b, i: (b, i, 0))
    # K block stays resident in VMEM across the inner Lq-tile axis.
    k_spec = pl.BlockSpec((bb, lk_pad, D), lambda b, i: (b, 0, 0))
    o_spec = pl.BlockSpec((bb, tq, lk_pad), lambda b, i: (b, i, 0))
    out_shape = jax.ShapeDtypeStruct((B, lq_pad, lk_pad), out_dtype)
    cparams = pltpu.CompilerParams(
        dimension_semantics=("parallel", "parallel"),
        vmem_limit_bytes=int(vmem_limit),
    )
    inv_temp = float(1.0 / temperature)

    if mask is None:
        out = pl.pallas_call(
            functools.partial(_sdp_kernel, inv_temp=inv_temp, lk_valid=Lk,
                              matmul_dtype=matmul_dtype),
            grid=grid,
            in_specs=[q_spec, k_spec],
            out_specs=o_spec,
            out_shape=out_shape,
            compiler_params=cparams,
        )(q, k)
    else:
        mask_f = mask.astype(jnp.float32)
        if lk_pad != Lk:
            mask_f = jnp.pad(mask_f, ((0, 0), (0, lk_pad - Lk)))  # pads -> mask=0
        mask3 = mask_f[:, None, :]                                 # [B, 1, Lk_pad]
        m_spec = pl.BlockSpec((bb, 1, lk_pad), lambda b, i: (b, 0, 0))
        out = pl.pallas_call(
            functools.partial(_sdp_masked_kernel, inv_temp=inv_temp,
                              matmul_dtype=matmul_dtype),
            grid=grid,
            in_specs=[q_spec, k_spec, m_spec],
            out_specs=o_spec,
            out_shape=out_shape,
            compiler_params=cparams,
        )(q, k, mask3)

    if lq_pad != Lq or lk_pad != Lk:
        out = out[:, :Lq, :Lk]
    if not batchlize:
        out = out[0]
    return out


def _reference(q, k, mask, temperature, matmul_dtype=None):
    """Pure-JAX reference of the PyTorch module (allennlp masked_softmax,
    standard path).  matmul_dtype optionally mimics the kernel's bf16 MXU
    operands (f32 accumulate) so comparisons can use tight tolerances."""
    if matmul_dtype is not None:
        qm = (q * (1.0 / temperature)).astype(matmul_dtype).astype(jnp.float32)
        km = k.astype(matmul_dtype).astype(jnp.float32)
        s = jnp.einsum("bqd,bkd->bqk", qm, km,
                       preferred_element_type=jnp.float32,
                       precision=lax.Precision.HIGHEST)
    else:
        s = jnp.einsum("bqd,bkd->bqk", q, k,
                       preferred_element_type=jnp.float32,
                       precision=lax.Precision.HIGHEST) / temperature
    if mask is None:
        return jax.nn.softmax(s, axis=-1)
    m = jnp.broadcast_to(mask.astype(jnp.float32)[:, None, :], s.shape)
    r = jax.nn.softmax(s * m, axis=-1) * m
    return r / (jnp.sum(r, axis=-1, keepdims=True) + _TINY)


if __name__ == "__main__":
    key = jax.random.PRNGKey(0)
    B, Lq, Lk, D = 2, 8, 8, 32
    temperature = math.sqrt(D)

    kq, kk = jax.random.split(key)
    q = jax.random.normal(kq, (B, Lq, D), dtype=jnp.float32)
    k = jax.random.normal(kk, (B, Lk, D), dtype=jnp.float32)
    # mask: last two key positions of batch 1 are padding
    mask = jnp.ones((B, Lk), dtype=jnp.float32).at[1, -2:].set(0.0)

    out_nomask = scaled_dot_product(q, k, None, temperature=temperature)
    out_masked = scaled_dot_product(q, k, mask, temperature=temperature)

    # exercise the multi-tile Lq grid (K block resident across Lq tiles)
    Lq2 = 16
    q2 = jax.random.normal(jax.random.PRNGKey(1), (B, Lq2, D), dtype=jnp.float32)
    out_tiled = scaled_dot_product(q2, k, mask, temperature=temperature, max_tq=8)

    # 2-D (non-batched) path
    out_2d = scaled_dot_product(q[0], k[0], None, temperature=temperature)

    jax.block_until_ready((out_nomask, out_masked, out_tiled, out_2d))

    # Tight check vs. a reference mirroring the kernel's bf16 MXU operands.
    bf = jnp.bfloat16
    ref_nomask = _reference(q, k, None, temperature, matmul_dtype=bf)
    ref_masked = _reference(q, k, mask, temperature, matmul_dtype=bf)
    ref_tiled = _reference(q2, k, mask, temperature, matmul_dtype=bf)
    ref_2d = _reference(q[:1], k[:1], None, temperature, matmul_dtype=bf)[0]

    tol = dict(atol=2e-3, rtol=2e-3)
    assert jnp.allclose(out_nomask, ref_nomask, **tol)
    assert jnp.allclose(out_masked, ref_masked, **tol)
    assert jnp.allclose(out_tiled, ref_tiled, **tol)
    assert jnp.allclose(out_2d, ref_2d, **tol)

    # Looser sanity check against exact-f32 module semantics (error here is
    # purely the bf16 rounding of the MXU operands; outputs are probabilities).
    ref32_masked = _reference(q, k, mask, temperature, matmul_dtype=None)
    assert jnp.allclose(out_masked, ref32_masked, atol=2e-2, rtol=2e-2)

    print("KERNEL_OK")
</pallas_src>

<mosaic_0001>
module attributes {stable_mosaic.version = 11 : i64} {
  func.func @_sdp_kernel(%arg0: i32, %arg1: i32, %arg2: memref<2x8x32xf32, #tpu.memory_space<vmem>>, %arg3: memref<2x128x32xbf16, #tpu.memory_space<vmem>>, %arg4: memref<2x8x128xf32, #tpu.memory_space<vmem>>) attributes {dimension_semantics = [#tpu.dimension_semantics<parallel>, #tpu.dimension_semantics<parallel>], iteration_bounds = array<i64: 1, 1>, scalar_prefetch = 0 : i64, scratch_operands = 0 : i64, tpu.core_type = #tpu.core_type<tc>, window_params = [{transform_indices = @transform_0, window_bounds = array<i64: 2, 8, 32>}, {transform_indices = @transform_1, window_bounds = array<i64: 2, 128, 32>}, {transform_indices = @transform_2, window_bounds = array<i64: 2, 8, 128>}]} {
    %c0 = arith.constant 0 : index
    %c0_0 = arith.constant 0 : index
    %c0_1 = arith.constant 0 : index
    %0 = vector.load %arg2[%c0, %c0_0, %c0_1] : memref<2x8x32xf32, #tpu.memory_space<vmem>>, vector<2x8x32xf32>
    %cst = arith.constant 0.176776692 : f32
    %1 = vector.broadcast %cst : f32 to vector<2x8x32xf32>
    %2 = arith.mulf %0, %1 : vector<2x8x32xf32>
    %3 = arith.truncf %2 : vector<2x8x32xf32> to vector<2x8x32xbf16>
    %c0_2 = arith.constant 0 : index
    %c0_3 = arith.constant 0 : index
    %c0_4 = arith.constant 0 : index
    %4 = vector.load %arg3[%c0_2, %c0_3, %c0_4] : memref<2x128x32xbf16, #tpu.memory_space<vmem>>, vector<2x128x32xbf16>
    %cst_5 = arith.constant dense<0.000000e+00> : vector<2x8x128xf32>
    %5 = tpu.matmul %3, %4, %cst_5 {dimension_numbers = #tpu.dot_dimension_numbers<[2], [2], [1], [1], [0, 0, 0, 1, 1, 1], [0], [0]>} : vector<2x8x32xbf16>, vector<2x128x32xbf16>, vector<2x8x128xf32> -> vector<2x8x128xf32>
    %6 = tpu.iota {dimensions = array<i32: 2>} : vector<1x1x128xi32>
    %c8_i32 = arith.constant 8 : i32
    %7 = vector.broadcast %c8_i32 : i32 to vector<1x1x128xi32>
    %8 = arith.cmpi slt, %6, %7 : vector<1x1x128xi32>
    %cst_6 = arith.constant -1.000000e+30 : f32
    %9 = vector.shape_cast %8 : vector<1x1x128xi1> to vector<1x1x128xi1>
    %10 = vector.broadcast %9 : vector<1x1x128xi1> to vector<2x8x128xi1>
    %11 = vector.broadcast %cst_6 : f32 to vector<2x8x128xf32>
    %12 = arith.select %10, %5, %11 : vector<2x8x128xi1>, vector<2x8x128xf32>
    %cst_7 = arith.constant dense<0xFF800000> : vector<2x8xf32>
    %13 = vector.multi_reduction <maximumf>, %12, %cst_7 [2] : vector<2x8x128xf32> to vector<2x8xf32>
    %14 = vector.shape_cast %13 : vector<2x8xf32> to vector<2x8x1xf32>
    %15 = vector.broadcast %14 : vector<2x8x1xf32> to vector<2x8x128xf32>
    %16 = arith.subf %12, %15 : vector<2x8x128xf32>
    %17 = math.exp %16 : vector<2x8x128xf32>
    %cst_8 = arith.constant dense<0.000000e+00> : vector<2x8xf32>
    %18 = vector.multi_reduction <add>, %17, %cst_8 [2] : vector<2x8x128xf32> to vector<2x8xf32>
    %19 = vector.shape_cast %18 : vector<2x8xf32> to vector<2x8x1xf32>
    %cst_9 = arith.constant 1.000000e+00 : f32
    %20 = vector.broadcast %cst_9 : f32 to vector<2x8x1xf32>
    %21 = arith.divf %20, %19 : vector<2x8x1xf32>
    %22 = vector.broadcast %21 : vector<2x8x1xf32> to vector<2x8x128xf32>
    %23 = arith.mulf %17, %22 : vector<2x8x128xf32>
    %c0_10 = arith.constant 0 : index
    %c0_11 = arith.constant 0 : index
    %c0_12 = arith.constant 0 : index
    %24 = vector.load %arg4[%c0_10, %c0_11, %c0_12] : memref<2x8x128xf32, #tpu.memory_space<vmem>>, vector<2x8x128xf32>
    tpu.vector_store %arg4[%c0_10, %c0_11, %c0_12], %23 {strides = array<i32>} : memref<2x8x128xf32, #tpu.memory_space<vmem>>, vector<2x8x128xf32>,
    return
  }
  func.func @transform_0(%arg0: i32, %arg1: i32) -> (i32, i32, i32) {
    %c0_i32 = arith.constant 0 : i32
    %c0_i32_0 = arith.constant 0 : i32
    return %arg0, %arg1, %c0_i32 : i32, i32, i32
  }
  func.func @transform_1(%arg0: i32, %arg1: i32) -> (i32, i32, i32) {
    %c0_i32 = arith.constant 0 : i32
    %c0_i32_0 = arith.constant 0 : i32
    %c0_i32_1 = arith.constant 0 : i32
    return %arg0, %c0_i32, %c0_i32_0 : i32, i32, i32
  }
  func.func @transform_2(%arg0: i32, %arg1: i32) -> (i32, i32, i32) {
    %c0_i32 = arith.constant 0 : i32
    %c0_i32_0 = arith.constant 0 : i32
    return %arg0, %arg1, %c0_i32 : i32, i32, i32
  }
}

</mosaic_0001>

<bundles_post_ra>
// kernel: tpu_custom_call.1
= control target key start
LH: loop header
LB: loop body
LE: loop exit
PB: predicated region body
PF: predicated region fallthrough
CT: control target
= control target key end

     0   :  { %v440_v1 = vmov 0.0   ;;  %vm91_vm0 = vcmask 261120   ;;  %s544_s0 = inlined_call_operand.vmem [shape: f32[2,8,32], index: 0, kind: input, shape index: {}]   ;;  %s545_s1 = inlined_call_operand.vmem [shape: bf16[2,128,32], index: 1, kind: input, shape index: {}]   ;;  %s546_s2 = inlined_call_operand.hbm [shape: f32[2,8,128], index: 2, kind: output, shape index: {}]  }
   0x1   :  { %v392_v0 = vld [vmem:[%s545_s1] sm:$0xff]   ;;  %347 = vmatprep.subr.bf16.mxu0 %v440_v1  ;;  %367 = vmatprep.subr.bf16.mxu1 %v440_v1  ;;  %v394_v5 = vld [vmem:[%s545_s1 + $0x8] sm:$0xff]   ;;  %v396_v9 = vld [vmem:[%s545_s1 + $0x10] sm:$0xff]  }
   0x2   :  { %v393_v2 = vld [vmem:[%s545_s1 + $0x40] sm:$0xff]   ;;  %v96_v3 = vsel %vm91_vm0, %v392_v0, 0  ;;  %v395_v6 = vld [vmem:[%s545_s1 + $0x48] sm:$0xff]   ;;  %v99_v7 = vsel %vm91_vm0, %v394_v5, 0  ;;  %v397_v10 = vld [vmem:[%s545_s1 + $0x50] sm:$0xff]   ;;  %v102_v11 = vsel %vm91_vm0, %v396_v9, 0 }
   0x3   :  { %348 = vmatpush3.bf16.xpose.msra.mxu0 %v96_v3  ;;  %v203_v4 = vsel %vm91_vm0, %v393_v2, 0  ;;  %v206_v8 = vsel %vm91_vm0, %v395_v6, 0 }
   0x4   :  { %368 = vmatpush3.bf16.xpose.msra.mxu1 %v203_v4  ;;  %349 = vmatprep.subr.bf16.mxu0 %v440_v1 }
   0x5   :  { %369 = vmatprep.subr.bf16.mxu1 %v440_v1 }
   0xb   :  { %350 = vmatpush3.bf16.xpose.msra.mxu0 %v99_v7 }
   0xc   :  { %370 = vmatpush3.bf16.xpose.msra.mxu1 %v206_v8  ;;  %351 = vmatprep.subr.bf16.mxu0 %v440_v1 }
   0xd   :  { %371 = vmatprep.subr.bf16.mxu1 %v440_v1 }
   0xe   :  { %7 = vsyncpa [#allocation3], 0  ;;  %v209_v12 = vsel %vm91_vm0, %v397_v10, 0  ;;  %vm441_vm1 = vmmov 0   ;;  %v398_v13 = vld [vmem:[%s545_s1 + $0x18] sm:$0xff]   ;;  %v400_v17 = vld [vmem:[%s545_s1 + $0x20] sm:$0xff]   ;;  %v266_v39 = vlaneseq }
   0xf   :  { %363 = vmatprep.mubr.msk.bf16.mxu0 %vm441_vm1, %v440_v1  ;;  %383 = vmatprep.mubr.msk.bf16.mxu1 %vm441_vm1, %v440_v1  ;;  %v399_v14 = vld [vmem:[%s545_s1 + $0x58] sm:$0xff]   ;;  %v105_v15 = vsel %vm91_vm0, %v398_v13, 0  ;;  %v401_v18 = vld [vmem:[%s545_s1 + $0x60] sm:$0xff]   ;;  %v108_v19 = vsel %vm91_vm0, %v400_v17, 0  ;;  %v402_v21 = vld [vmem:[%s545_s1 + $0x28] sm:$0xff]  }
  0x10   :  { %v212_v16 = vsel %vm91_vm0, %v399_v14, 0  ;;  %v215_v20 = vsel %vm91_vm0, %v401_v18, 0  ;;  %v403_v22 = vld [vmem:[%s545_s1 + $0x68] sm:$0xff]   ;;  %v111_v23 = vsel %vm91_vm0, %v402_v21, 0  ;;  %v404_v25 = vld [vmem:[%s545_s1 + $0x30] sm:$0xff]   ;;  %v406_v29 = vld [vmem:[%s545_s1 + $0x38] sm:$0xff]  }
  0x11   :  { %v218_v24 = vsel %vm91_vm0, %v403_v22, 0  ;;  %v405_v26 = vld [vmem:[%s545_s1 + $0x70] sm:$0xff]   ;;  %v114_v27 = vsel %vm91_vm0, %v404_v25, 0  ;;  %v407_v30 = vld [vmem:[%s545_s1 + $0x78] sm:$0xff]   ;;  %v13_v31 = vld [vmem:[%s544_s0] sm:$0xff]  ;;  %v117_v32 = vsel %vm91_vm0, %v406_v29, 0 }
  0x12   :  { %v221_v28 = vsel %vm91_vm0, %v405_v26, 0  ;;  %v14_v33 = vld [vmem:[%s544_s0 + $0x8] sm:$0xff]  ;;  %v224_v34 = vsel %vm91_vm0, %v407_v30, 0  ;;  %v15_v35 = vmul.f32 0.17677669, %v13_v31  ;;  %v267_v40 = vand.u32 127, %v266_v39 }
  0x13   :  { %352 = vmatpush3.bf16.xpose.msra.mxu0 %v102_v11  ;;  %v16_v36 = vmul.f32 0.17677669, %v14_v33  ;;  %s442_s0 = smov [#allocation2]  }
  0x14   :  { %372 = vmatpush3.bf16.xpose.msra.mxu1 %v209_v12  ;;  %353 = vmatprep.subr.bf16.mxu0 %v440_v1  ;;  %v17_v37 = vpack.c.bf16 %v15_v35, %v15_v35  ;;  %vm268_vm2 = vcmp.lt.s32.totalorder %v267_v40, 8  ;;  %s300_s1 = sshll.u32 %s442_s0, 4  ;;  %s301_s1 = int_to_ptr.vmem [resolvable:$true] %s300_s1 }
  0x15   :  { %373 = vmatprep.subr.bf16.mxu1 %v440_v1  ;;  %v18_v38 = vpack.c.bf16 %v16_v36, %v16_v36  ;;  %s416_s17 = scalar_lea.vmem %s301_s1, 256  ;;  %p421_p1 = scmp.lt.s32.totalorder %s301_s1, %s301_s1 }
  0x16   :  { %p417_p0 = scmp.ne.s32.totalorder %s301_s1, %s416_s17  ;;  %p422_p2 = scmp.lt.s32.totalorder %s416_s17, %s416_s17 }
  0x18   :  { %p423_p3 = por %p422_p2, %p421_p1 }
  0x1a   :  { %p424_p4 = pnand %p423_p3, %p417_p0 }
  0x1b   :  { %354 = vmatpush3.bf16.xpose.msra.mxu0 %v105_v15 }
  0x1c   :  { %374 = vmatpush3.bf16.xpose.msra.mxu1 %v212_v16  ;;  %355 = vmatprep.subr.bf16.mxu0 %v440_v1 }
  0x1d   :  { %375 = vmatprep.subr.bf16.mxu1 %v440_v1 }
  0x23   :  { %356 = vmatpush3.bf16.xpose.msra.mxu0 %v108_v19 }
  0x24   :  { %376 = vmatpush3.bf16.xpose.msra.mxu1 %v215_v20  ;;  %357 = vmatprep.subr.bf16.mxu0 %v440_v1 }
  0x25   :  { %377 = vmatprep.subr.bf16.mxu1 %v440_v1 }
  0x2b   :  { %358 = vmatpush3.bf16.xpose.msra.mxu0 %v111_v23 }
  0x2c   :  { %378 = vmatpush3.bf16.xpose.msra.mxu1 %v218_v24  ;;  %359 = vmatprep.subr.bf16.mxu0 %v440_v1 }
  0x2d   :  { %379 = vmatprep.subr.bf16.mxu1 %v440_v1 }
  0x33   :  { %360 = vmatpush3.bf16.xpose.msra.mxu0 %v114_v27 }
  0x34   :  { %380 = vmatpush3.bf16.xpose.msra.mxu1 %v221_v28  ;;  %361 = vmatprep.subr.bf16.mxu0 %v440_v1 }
  0x35   :  { %381 = vmatprep.subr.bf16.mxu1 %v440_v1 }
  0x3b   :  { %362 = vmatpush3.bf16.xpose.msra.mxu0 %v117_v32 }
  0x3c   :  { %382 = vmatpush3.bf16.xpose.msra.mxu1 %v224_v34 }
  0x42   :  { %364 = vmatmul.mubr.msk.bf16.vlgmr.msra.gmra.mrb[0].mxu0 %vm91_vm0, %v17_v37 }
  0x43   :  { %384 = vmatmul.mubr.msk.bf16.vlgmr.msra.gmra.mrb[0].mxu1 %vm91_vm0, %v18_v38 }
 0x115   :  { %v153_v41 = vpop.f32.mrb[0].mxu0 }
 0x116   :  { %v365_v42 = vpop.f32.mrb[1].mxu0  ;;  %v260_v43 = vpop.f32.mrb[0].mxu1  ;;  %v271_v44 = vsel %vm268_vm2, %v153_v41, -1e+30 }
 0x117   :  { %v385_v45 = vpop.f32.mrb[1].mxu1  ;;  %273 = vmax.xlane.f32.xlu0 %v271_v44  ;;  %v156_v46 = vpop.f32.mrb[2].mxu0  ;;  %v272_v49 = vsel %vm268_vm2, %v260_v43, -1e+30 }
 0x118   :  { %v366_v47 = vpop.f32.mrb[3].mxu0  ;;  %v263_v48 = vpop.f32.mrb[2].mxu1 }
 0x119   :  { %v386_v50 = vpop.f32.mrb[3].mxu1 }
 0x11b   :  { %275 = vmax.xlane.f32.xlu0 %v272_v49 }
 0x1a4   :  { %v274_v51 = vpop.xlane.xlu0 %273 }
 0x1a5   :  { %v277_v52 = vsub.f32 %v271_v44, %v274_v51 }
 0x1a7   :  { %v279_v53 = vmul.f32 1.442695, %v277_v52 }
 0x1a8   :  { %v276_v54 = vpop.xlane.xlu0 %275 }
 0x1a9   :  { %408 = vpow2.f32 %v279_v53  ;;  %v278_v55 = vsub.f32 %v272_v49, %v276_v54 }
 0x1ab   :  { %v281_v56 = vmul.f32 1.442695, %v278_v55 }
 0x1ad   :  { %410 = vpow2.f32 %v281_v56 }
 0x1b3   :  { %v409_v57 = vpop.eup %408 }
 0x1b4   :  { %283 = vadd.xlane.f32.xlu1 %v409_v57 }
 0x1b7   :  { %v411_v58 = vpop.eup %410 }
 0x1b8   :  { %285 = vadd.xlane.f32.xlu1 %v411_v58 }
 0x241   :  { %v284_v59 = vpop.xlane.xlu1 %283 }
 0x242   :  { %412 = vrcp.f32 %v284_v59 }
 0x245   :  { %v286_v60 = vpop.xlane.xlu1 %285 }
 0x246   :  { %414 = vrcp.f32 %v286_v60 }
 0x24c   :  { %v413_v61 = vpop.eup %412 }
 0x24d   :  { %v291_v62 = vmul.f32 %v413_v61, %v409_v57 }
 0x24f   :  { %293 = vst [vmem:[#allocation2] sm:$0xff] %v291_v62 }
 0x250   :  { %v415_v63 = vpop.eup %414 }
 0x251   :  { %v292_v0 = vmul.f32 %v415_v63, %v411_v58 }
 0x253   :  { %294 = vst [vmem:[#allocation2 + $0x8] sm:$0xff] %v292_v0 }
 0x254   :  { %427 = shalt.err (!%p424_p4)
}
 0x255   :  { %s428_s20 = scalar_lea.hbm %s546_s2, 256 }
 0x256   :  { %p429_p5 = scmp.ne.s32.totalorder %s546_s2, %s428_s20  ;;  %p432_p6 = scmp.lt.u32.totalorder %s428_s20, %s546_s2 }
 0x258   :  { %p434_p7 = pnand %p432_p6, %p429_p5 }
 0x25a   :  { %437 = shalt.err (!%p434_p7)
}
 0x25b   :  { %s443_s25 = smov 128   ;;  %s444_s26 = smov 8  }
 0x25c   :  { %306 = dma.vmem_to_hbm [thread:$0]  %s301_s1, 256, %s546_s2, [#allocation3], %s443_s25, %s443_s25, %s444_s26  }
 0x25d   :  { %438 = dma.done.wait [#allocation3], 256  }
 0x25e   :  { %439 = vsyncadd [#allocation3], 4294967040 }
 0x25f   :  { %310 = vsyncpa [#allocation3], 1 }

</bundles_post_ra>
